<compile_context>
chip_gen: v7x
topology: tpu7x:2x2x1
jax: 0.10.0
libtpu: 0.0.40
codegen_flags: <defaults>
</compile_context>

<pallas_src>
import jax
import jax.numpy as jnp
from jax.experimental import pallas as pl
from jax.experimental.pallas import tpu as pltpu


def _round_up(x, m):
    return ((x + m - 1) // m) * m


def _tiles(n, tile_m, tile_k):
    tm = min(tile_m, _round_up(n, 128))
    tk = min(tile_k, _round_up(n, 128))
    n_m = _round_up(n, tm)   # padded rows of adj / output
    n_k = _round_up(n, tk)   # padded contraction dim (adj cols == x rows)
    return tm, tk, n_m, n_k


def prepare_adj(adj, *, tile_m=2048, tile_k=2048, compute_dtype=jnp.bfloat16):
    """Cast + zero-pad the dense adjacency once.

    adj is static across layers / training steps, so do this once and cache the
    result; gcn_layer() will detect the prepared (padded, compute-dtype) form
    and skip its own per-call pad/cast pass.
    """
    n = adj.shape[0]
    assert adj.shape == (n, n)
    _, _, n_m, n_k = _tiles(n, tile_m, tile_k)
    return jnp.pad(adj.astype(compute_dtype), ((0, n_m - n), (0, n_k - n)))


# -----------------------------------------------------------------------------
# Fused kernel: out[i, :] += adj[i, k] @ (x[k, :] @ W)
#   adj_ref : (tm, tk)          bf16    streamed per (i, k)
#   x_ref   : (tk, F_in_pad)    bf16    streamed per k (re-read per row tile)
#   w_ref   : (F_in_pad, F_pad) bf16    grid-invariant (resident)
#   out_ref : (tm, F_pad)       f32     resident across k -> used as accumulator
# -----------------------------------------------------------------------------
def _gcn_fused_kernel(adj_ref, x_ref, w_ref, out_ref):
    k = pl.program_id(1)

    @pl.when(k == 0)
    def _():
        out_ref[...] = jnp.zeros_like(out_ref)

    support = jnp.dot(
        x_ref[...], w_ref[...], preferred_element_type=jnp.float32
    ).astype(adj_ref.dtype)
    out_ref[...] += jnp.dot(
        adj_ref[...], support, preferred_element_type=jnp.float32
    )


def gcn_layer(x, weight, adj, *, dropout=0.0,
              compute_dtype=jnp.bfloat16, tile_m=2048, tile_k=2048):
    """Pallas GCN layer: adj @ (dropout(x) @ weight).

    x:      [N, F_in]     float32
    weight: [F_in, F_out] float32
    adj:    either the raw [N, N] float32 normalized adjacency, or the output
            of prepare_adj() (padded, compute-dtype) to skip the per-call
            cast+pad pass.
    returns [N, F_out]    float32
    """
    N, F_in = x.shape
    F_out = weight.shape[1]

    # TODO(synk): training-mode dropout (p > 0) would use pltpu.prng_seed +
    # pltpu.stateful_bernoulli on the x tiles; module default (p=0.0 / eval)
    # is the identity, which is what is implemented here.
    if dropout != 0.0:
        raise NotImplementedError(
            "gcn_layer implements dropout == 0.0 (module default / eval) only."
        )

    cdt = jnp.dtype(compute_dtype)

    # Lane-dense zero-padding of both feature dims (zeros are exact in bf16
    # and do not change the matmul result); sliced back at the end.
    F_in_pad = _round_up(F_in, 128)
    F_pad = _round_up(F_out, 128)
    tm, tk, N_m, N_k = _tiles(N, tile_m, tile_k)

    # x / W prep is cheap (O(N*F) bytes).
    x_p = jnp.pad(x.astype(cdt), ((0, N_k - N), (0, F_in_pad - F_in)))
    w_p = jnp.pad(weight.astype(cdt), ((0, F_in_pad - F_in), (0, F_pad - F_out)))

    # adj prep is the expensive one (reads 4*N^2 + writes 2*N^2 bytes); reuse a
    # prepared adjacency when supplied.
    if adj.shape == (N_m, N_k) and adj.dtype == cdt:
        adj_p = adj
    else:
        assert adj.shape == (N, N)
        adj_p = jnp.pad(adj.astype(cdt), ((0, N_m - N), (0, N_k - N)))

    grid = (N_m // tm, N_k // tk)
    n_row_tiles = grid[0]

    bytes_accessed = (
        adj_p.size * adj_p.dtype.itemsize                 # adj streamed once
        + n_row_tiles * x_p.size * x_p.dtype.itemsize     # x re-read per row tile
        + w_p.size * w_p.dtype.itemsize                   # W resident
        + N_m * F_pad * 4                                 # f32 output
    )
    cost = pl.CostEstimate(
        flops=2 * N_m * N_k * F_pad                       # adj @ support
        + n_row_tiles * 2 * N_k * F_in_pad * F_pad,       # recomputed x @ W
        transcendentals=0,
        bytes_accessed=bytes_accessed,
    )

    out_p = pl.pallas_call(
        _gcn_fused_kernel,
        out_shape=jax.ShapeDtypeStruct((N_m, F_pad), jnp.float32),
        grid=grid,
        in_specs=[
            pl.BlockSpec((tm, tk), lambda i, k: (i, k)),            # adj tile
            pl.BlockSpec((tk, F_in_pad), lambda i, k: (k, 0)),      # x chunk
            pl.BlockSpec((F_in_pad, F_pad), lambda i, k: (0, 0)),   # W (resident)
        ],
        out_specs=pl.BlockSpec((tm, F_pad), lambda i, k: (i, 0)),
        compiler_params=pltpu.CompilerParams(
            dimension_semantics=("parallel", "arbitrary"),
            # Explicit limit: > v5e's 16 MiB default scoped VMEM, fits the
            # ~19 MiB footprint at 2048 tiles, and leaves headroom under
            # v7x's 64 MiB physical VMEM.
            vmem_limit_bytes=48 * 1024 * 1024,
        ),
        cost_estimate=cost,
    )(adj_p, x_p, w_p)

    return out_p[:N, :F_out].astype(x.dtype)


def xavier_uniform(key, shape, dtype=jnp.float32):
    fan_in, fan_out = shape
    bound = jnp.sqrt(6.0 / (fan_in + fan_out))
    return jax.random.uniform(key, shape, dtype=dtype, minval=-bound, maxval=bound)


if __name__ == "__main__":
    key = jax.random.PRNGKey(0)
    k_x, k_w, k_a = jax.random.split(key, 3)

    N, F_in, F_out = 256, 64, 32

    x = jax.random.normal(k_x, (N, F_in), dtype=jnp.float32)
    weight = xavier_uniform(k_w, (F_in, F_out))

    # Dense symmetric "adjacency" with self loops, row-normalized.
    a = (jax.random.uniform(k_a, (N, N)) < 0.1).astype(jnp.float32)
    a = jnp.maximum(a, a.T) + jnp.eye(N, dtype=jnp.float32)
    adj = a / jnp.sum(a, axis=1, keepdims=True)

    # adj is static across layers / steps: cast + pad it once and reuse.
    adj_prepared = prepare_adj(adj)

    out = gcn_layer(x, weight, adj_prepared)
    out = jax.block_until_ready(out)

    # Reference check against plain f32 JAX. Operands are streamed in bf16
    # (f32 accumulation), so tolerance is loosened accordingly.
    ref = adj @ (x @ weight)
    assert out.shape == (N, F_out)
    assert jnp.allclose(out, ref, atol=3e-2, rtol=3e-2), float(
        jnp.max(jnp.abs(out - ref))
    )

    print("KERNEL_OK")
</pallas_src>

<mosaic_0001>
module attributes {stable_mosaic.version = 11 : i64} {
  func.func @_gcn_fused_kernel(%arg0: i32, %arg1: i32, %arg2: memref<256x256xbf16, #tpu.memory_space<vmem>>, %arg3: memref<256x128xbf16, #tpu.memory_space<vmem>>, %arg4: memref<128x128xbf16, #tpu.memory_space<vmem>>, %arg5: memref<256x128xf32, #tpu.memory_space<vmem>>) attributes {dimension_semantics = [#tpu.dimension_semantics<parallel>, #tpu.dimension_semantics<arbitrary>], iteration_bounds = array<i64: 1, 1>, scalar_prefetch = 0 : i64, scratch_operands = 0 : i64, tpu.core_type = #tpu.core_type<tc>, window_params = [{transform_indices = @transform_0, window_bounds = array<i64: 256, 256>}, {transform_indices = @transform_1, window_bounds = array<i64: 256, 128>}, {pipeline_mode = #tpu.pipeline_mode<synchronous>, transform_indices = @transform_2, window_bounds = array<i64: 128, 128>}, {transform_indices = @transform_3, window_bounds = array<i64: 256, 128>}]} {
    %c0_i32 = arith.constant 0 : i32
    %0 = arith.cmpi eq, %arg1, %c0_i32 : i32
    %1 = arith.extui %0 : i1 to i32
    %c0_i32_0 = arith.constant 0 : i32
    %2 = arith.cmpi ne, %1, %c0_i32_0 : i32
    scf.if %2 {
      %cst_11 = arith.constant 0.000000e+00 : f32
      %12 = vector.broadcast %cst_11 : f32 to vector<256x128xf32>
      %c0_12 = arith.constant 0 : index
      %c0_13 = arith.constant 0 : index
      %13 = vector.load %arg5[%c0_12, %c0_13] : memref<256x128xf32, #tpu.memory_space<vmem>>, vector<256x128xf32>
      tpu.vector_store %arg5[%c0_12, %c0_13], %12 {strides = array<i32>} : memref<256x128xf32, #tpu.memory_space<vmem>>, vector<256x128xf32>,
    } else {
    }
    %c0 = arith.constant 0 : index
    %c0_1 = arith.constant 0 : index
    %3 = vector.load %arg3[%c0, %c0_1] : memref<256x128xbf16, #tpu.memory_space<vmem>>, vector<256x128xbf16>
    %c0_2 = arith.constant 0 : index
    %c0_3 = arith.constant 0 : index
    %4 = vector.load %arg4[%c0_2, %c0_3] : memref<128x128xbf16, #tpu.memory_space<vmem>>, vector<128x128xbf16>
    %cst = arith.constant dense<0.000000e+00> : vector<256x128xf32>
    %5 = tpu.matmul %3, %4, %cst {dimension_numbers = #tpu.dot_dimension_numbers<[1], [0], [0], [1], [0, 0, 1, 1], [], []>} : vector<256x128xbf16>, vector<128x128xbf16>, vector<256x128xf32> -> vector<256x128xf32>
    %6 = arith.truncf %5 : vector<256x128xf32> to vector<256x128xbf16>
    %c0_4 = arith.constant 0 : index
    %c0_5 = arith.constant 0 : index
    %7 = vector.load %arg5[%c0_4, %c0_5] : memref<256x128xf32, #tpu.memory_space<vmem>>, vector<256x128xf32>
    %c0_6 = arith.constant 0 : index
    %c0_7 = arith.constant 0 : index
    %8 = vector.load %arg2[%c0_6, %c0_7] : memref<256x256xbf16, #tpu.memory_space<vmem>>, vector<256x256xbf16>
    %cst_8 = arith.constant dense<0.000000e+00> : vector<256x128xf32>
    %9 = tpu.matmul %8, %6, %cst_8 {dimension_numbers = #tpu.dot_dimension_numbers<[1], [0], [0], [1], [0, 0, 1, 1], [], []>} : vector<256x256xbf16>, vector<256x128xbf16>, vector<256x128xf32> -> vector<256x128xf32>
    %10 = arith.addf %7, %9 : vector<256x128xf32>
    %c0_9 = arith.constant 0 : index
    %c0_10 = arith.constant 0 : index
    %11 = vector.load %arg5[%c0_9, %c0_10] : memref<256x128xf32, #tpu.memory_space<vmem>>, vector<256x128xf32>
    tpu.vector_store %arg5[%c0_9, %c0_10], %10 {strides = array<i32>} : memref<256x128xf32, #tpu.memory_space<vmem>>, vector<256x128xf32>,
    return
  }
  func.func @transform_0(%arg0: i32, %arg1: i32) -> (i32, i32) {
    %c0_i32 = arith.constant 0 : i32
    return %arg0, %arg1 : i32, i32
  }
  func.func @transform_1(%arg0: i32, %arg1: i32) -> (i32, i32) {
    %c0_i32 = arith.constant 0 : i32
    %c0_i32_0 = arith.constant 0 : i32
    return %arg1, %c0_i32 : i32, i32
  }
  func.func @transform_2(%arg0: i32, %arg1: i32) -> (i32, i32) {
    %c0_i32 = arith.constant 0 : i32
    %c0_i32_0 = arith.constant 0 : i32
    %c0_i32_1 = arith.constant 0 : i32
    return %c0_i32, %c0_i32_0 : i32, i32
  }
  func.func @transform_3(%arg0: i32, %arg1: i32) -> (i32, i32) {
    %c0_i32 = arith.constant 0 : i32
    %c0_i32_0 = arith.constant 0 : i32
    return %arg0, %c0_i32 : i32, i32
  }
}

</mosaic_0001>

<bundles_post_ra>
// kernel: tpu_custom_call.1
= control target key start
LH: loop header
LB: loop body
LE: loop exit
PB: predicated region body
PF: predicated region fallthrough
CT: control target
= control target key end

     0   :  { %8 = vsyncpa [#allocation3], 0  ;;  %s1448_s0 = inlined_call_operand.hbm [shape: bf16[256,256], index: 0, kind: input, shape index: {}]   ;;  %s1449_s1 = inlined_call_operand.hbm [shape: bf16[256,128], index: 1, kind: input, shape index: {}]   ;;  %s1450_s2 = inlined_call_operand.hbm [shape: bf16[128,128], index: 2, kind: input, shape index: {}]   ;;  %s1451_s3 = inlined_call_operand.hbm [shape: f32[256,128], index: 3, kind: output, shape index: {}]  }
   0x1   :  { %9 = vsyncpa [#allocation6], 0 }
   0x2   :  { %10 = vsyncpa [#allocation4], 0  ;;  %s1360_s12 = smov [#allocation5]   ;;  %s1266_s16 = scalar_lea.hbm %s1449_s1, 2048 }
   0x3   :  { %s28_s13 = sshll.u32 %s1360_s12, 4  ;;  %p1267_p0 = scmp.ne.s32.totalorder %s1449_s1, %s1266_s16  ;;  %s29_s13 = int_to_ptr.vmem [resolvable:$true] %s28_s13 }
   0x4   :  { %p1270_p1 = scmp.lt.u32.totalorder %s1266_s16, %s1449_s1 }
   0x6   :  { %p1272_p2 = pnand %p1270_p1, %p1267_p0 }
   0x8   :  { %1275 = shalt.err (!%p1272_p2)
}
   0x9   :  { %s1276_s21 = scalar_lea.vmem %s29_s13, 2048  ;;  %p1281_p4 = scmp.lt.s32.totalorder %s29_s13, %s29_s13 }
   0xa   :  { %p1277_p3 = scmp.ne.s32.totalorder %s29_s13, %s1276_s21  ;;  %p1282_p5 = scmp.lt.s32.totalorder %s1276_s21, %s1276_s21 }
   0xc   :  { %p1283_p6 = por %p1282_p5, %p1281_p4 }
   0xe   :  { %p1284_p7 = pnand %p1283_p6, %p1277_p3 }
  0x10   :  { %1287 = shalt.err (!%p1284_p7)
}
  0x11   :  { %s1361_s22 = smov 64   ;;  %s1362_s23 = smov 4  }
  0x12   :  { %34 = dma.hbm_to_vmem [thread:$0]  %s1449_s1, 2048, %s29_s13, [#allocation6], %s1361_s22, %s1361_s22, %s1362_s23  }
  0x13   :  { %s1363_s26 = smov [#allocation2]   ;;  %s1288_s30 = scalar_lea.hbm %s1448_s0, 4096 }
  0x14   :  { %s16_s27 = sshll.u32 %s1363_s26, 4  ;;  %p1289_p8 = scmp.ne.s32.totalorder %s1448_s0, %s1288_s30  ;;  %s17_s27 = int_to_ptr.vmem [resolvable:$true] %s16_s27 }
  0x15   :  { %p1292_p9 = scmp.lt.u32.totalorder %s1288_s30, %s1448_s0 }
  0x17   :  { %p1294_p10 = pnand %p1292_p9, %p1289_p8 }
  0x19   :  { %1297 = shalt.err (!%p1294_p10)
}
  0x1a   :  { %s1298_s8 = scalar_lea.vmem %s17_s27, 4096  ;;  %p1303_p12 = scmp.lt.s32.totalorder %s17_s27, %s17_s27 }
  0x1b   :  { %p1299_p11 = scmp.ne.s32.totalorder %s17_s27, %s1298_s8  ;;  %p1304_p13 = scmp.lt.s32.totalorder %s1298_s8, %s1298_s8 }
  0x1d   :  { %p1305_p0 = por %p1304_p13, %p1303_p12 }
  0x1f   :  { %p1306_p1 = pnand %p1305_p0, %p1299_p11 }
  0x21   :  { %1309 = shalt.err (!%p1306_p1)
}
  0x22   :  { %s1364_s1 = smov 128   ;;  %s1365_s9 = smov 8  }
  0x23   :  { %22 = dma.hbm_to_vmem [thread:$0]  %s1448_s0, 4096, %s17_s27, [#allocation3], %s1364_s1, %s1364_s1, %s1365_s9  }
  0x24   :  { %s1366_s12 = smov [#allocation7]   ;;  %s1310_s16 = scalar_lea.hbm %s1450_s2, 1024 }
  0x25   :  { %s40_s13 = sshll.u32 %s1366_s12, 4  ;;  %p1311_p2 = scmp.ne.s32.totalorder %s1450_s2, %s1310_s16  ;;  %s41_s13 = int_to_ptr.vmem [resolvable:$true] %s40_s13 }
  0x26   :  { %p1314_p3 = scmp.lt.u32.totalorder %s1310_s16, %s1450_s2 }
  0x28   :  { %p1316_p4 = pnand %p1314_p3, %p1311_p2 }
  0x2a   :  { %1319 = shalt.err (!%p1316_p4)
}
  0x2b   :  { %s1320_s21 = scalar_lea.vmem %s41_s13, 1024  ;;  %p1325_p6 = scmp.lt.s32.totalorder %s41_s13, %s41_s13 }
  0x2c   :  { %p1321_p5 = scmp.ne.s32.totalorder %s41_s13, %s1320_s21  ;;  %p1326_p7 = scmp.lt.s32.totalorder %s1320_s21, %s1320_s21 }
  0x2e   :  { %p1327_p8 = por %p1326_p7, %p1325_p6 }
  0x30   :  { %p1328_p9 = pnand %p1327_p8, %p1321_p5 }
  0x32   :  { %1331 = shalt.err (!%p1328_p9)
}
  0x33   :  { %46 = dma.hbm_to_vmem [thread:$0]  %s1450_s2, 1024, %s41_s13, [#allocation6], %s1361_s22, %s1361_s22, %s1362_s23  }
  0x34   :  { %1354 = dma.done.wait [#allocation3], 4096  }
  0x35   :  { %1355 = vsyncadd [#allocation3], 4294963200 }
  0x36   :  { %1356 = dma.done.wait [#allocation6], 3072  }
  0x37   :  { %1357 = vsyncadd [#allocation6], 4294964224  ;;  %v1194_v0 = vld [vmem:[#allocation7] sm:$0xff]   ;;  %v1195_v1 = vld [vmem:[#allocation7 + $0x8] sm:$0xff]   ;;  %s1367_s2 = smov [#allocation8]  }
  0x38   :  { %1121 = vmatprep.subr.bf16.mxu0 %v1194_v0  ;;  %v1196_v2 = vld [vmem:[#allocation7 + $0x10] sm:$0xff]   ;;  %v1197_v3 = vld [vmem:[#allocation7 + $0x18] sm:$0xff]   ;;  %v1202_v4 = vld [vmem:[#allocation5] sm:$0xff]   ;;  %s916_s22 = sshll.u32 %s1367_s2, 4  ;;  %s917_s22 = int_to_ptr.vmem [resolvable:$true] %s916_s22 }
  0x39   :  { %1122 = vmatpush3.bf16.msra.mxu0 %v1194_v0  ;;  %1137 = vmatprep.mubr.bf16.mxu0 %v1202_v4  ;;  %v1198_v5 = vld [vmem:[#allocation7 + $0x20] sm:$0xff]   ;;  %v1199_v6 = vld [vmem:[#allocation7 + $0x28] sm:$0xff]   ;;  %v1200_v7 = vld [vmem:[#allocation7 + $0x30] sm:$0xff]   ;;  %s1332_s23 = scalar_lea.vmem %s917_s22, 4096  ;;  %p1337_p11 = scmp.lt.s32.totalorder %s917_s22, %s917_s22 }
  0x3a   :  { %1123 = vmatprep.subr.bf16.mxu0 %v1195_v1  ;;  %v1201_v8 = vld [vmem:[#allocation7 + $0x38] sm:$0xff]   ;;  %v1203_v9 = vld [vmem:[#allocation5 + $0x8] sm:$0xff]   ;;  %v1204_v10 = vld [vmem:[#allocation5 + $0x10] sm:$0xff]   ;;  %p1333_p10 = scmp.ne.s32.totalorder %s917_s22, %s1332_s23  ;;  %p1338_p12 = scmp.lt.s32.totalorder %s1332_s23, %s1332_s23 }
  0x3b   :  { %v1205_v11 = vld [vmem:[#allocation5 + $0x18] sm:$0xff]   ;;  %v1206_v12 = vld [vmem:[#allocation5 + $0x20] sm:$0xff]   ;;  %v1207_v13 = vld [vmem:[#allocation5 + $0x28] sm:$0xff]  }
  0x3c   :  { %v1208_v14 = vld [vmem:[#allocation5 + $0x30] sm:$0xff]   ;;  %v1209_v15 = vld [vmem:[#allocation5 + $0x38] sm:$0xff]   ;;  %v1210_v16 = vld [vmem:[#allocation5 + $0x40] sm:$0xff]   ;;  %p1339_p13 = por %p1338_p12, %p1337_p11 }
  0x3d   :  { %1124 = vmatpush3.bf16.msra.mxu0 %v1195_v1  ;;  %v1211_v17 = vld [vmem:[#allocation5 + $0x48] sm:$0xff]   ;;  %v1212_v18 = vld [vmem:[#allocation5 + $0x50] sm:$0xff]   ;;  %v1213_v19 = vld [vmem:[#allocation5 + $0x58] sm:$0xff]  }
  0x3e   :  { %1125 = vmatprep.subr.bf16.mxu0 %v1196_v2  ;;  %v1214_v20 = vld [vmem:[#allocation5 + $0x60] sm:$0xff]   ;;  %v1215_v21 = vld [vmem:[#allocation5 + $0x68] sm:$0xff]   ;;  %v1216_v22 = vld [vmem:[#allocation5 + $0x70] sm:$0xff]   ;;  %p1340_p0 = pnand %p1339_p13, %p1333_p10 }
  0x3f   :  { %v1217_v23 = vld [vmem:[#allocation5 + $0x78] sm:$0xff]   ;;  %v1220_v24 = vld [vmem:[#allocation2 + $0x44] ss:$8 sps:$4 sm:$0xff]  }
  0x40   :  { %750 = vmatprep.mubr.bf16.mxu1 %v1220_v24  ;;  %v1244_v25 = vld [vmem:[#allocation2 + $0x4] ss:$8 sps:$4 sm:$0xff]  }
  0x41   :  { %1126 = vmatpush3.bf16.msra.mxu0 %v1196_v2  ;;  %v1230_v24 = vld [vmem:[#allocation2 + $0x84] ss:$8 sps:$4 sm:$0xff]  }
  0x42   :  { %1127 = vmatprep.subr.bf16.mxu0 %v1197_v3 }
  0x45   :  { %1128 = vmatpush3.bf16.msra.mxu0 %v1197_v3 }
  0x46   :  { %1129 = vmatprep.subr.bf16.mxu0 %v1198_v5 }
  0x49   :  { %1130 = vmatpush3.bf16.msra.mxu0 %v1198_v5 }
  0x4a   :  { %1131 = vmatprep.subr.bf16.mxu0 %v1199_v6 }
  0x4d   :  { %1132 = vmatpush3.bf16.msra.mxu0 %v1199_v6 }
  0x4e   :  { %1133 = vmatprep.subr.bf16.mxu0 %v1200_v7 }
  0x51   :  { %1134 = vmatpush3.bf16.msra.mxu0 %v1200_v7 }
  0x52   :  { %1135 = vmatprep.subr.bf16.mxu0 %v1201_v8 }
  0x55   :  { %1136 = vmatpush3.bf16.msra.mxu0 %v1201_v8 }
  0x58   :  { %1138 = vmatmul.mubr.bf16.vlgmr.msra.gmra.mrb[0].mxu0 %v1203_v9 }
  0x59   :  { %1141 = vmatprep.mubr.bf16.mxu0 %v1204_v10  ;;  %v1218_v10 = vld [vmem:[#allocation2 + $0x40] ss:$8 sps:$4 sm:$0xff]  }
  0x60   :  { %1142 = vmatmul.mubr.bf16.gmra.mrb[4].mxu0 %v1205_v11  ;;  %v1242_v11 = vld [vmem:[#allocation2] ss:$8 sps:$4 sm:$0xff]  }
  0x61   :  { %1145 = vmatprep.mubr.bf16.mxu0 %v1206_v12  ;;  %v1221_v12 = vld [vmem:[#allocation2 + $0x54] ss:$8 sps:$4 sm:$0xff]  }
  0x68   :  { %1146 = vmatmul.mubr.bf16.gmra.mrb[8].mxu0 %v1207_v13  ;;  %v1248_v13 = vld [vmem:[#allocation2 + $0x14] ss:$8 sps:$4 sm:$0xff]  }
  0x69   :  { %1149 = vmatprep.mubr.bf16.mxu0 %v1208_v14  ;;  %v1223_v14 = vld [vmem:[#allocation2 + $0x50] ss:$8 sps:$4 sm:$0xff]  }
  0x70   :  { %1150 = vmatmul.mubr.bf16.gmra.mrb[12].mxu0 %v1209_v15  ;;  %v1250_v15 = vld [vmem:[#allocation2 + $0x10] ss:$8 sps:$4 sm:$0xff]  }
  0x71   :  { %1153 = vmatprep.mubr.bf16.mxu0 %v1210_v16  ;;  %v1224_v16 = vld [vmem:[#allocation2 + $0x64] ss:$8 sps:$4 sm:$0xff]  }
  0x78   :  { %1154 = vmatmul.mubr.bf16.gmra.mrb[16].mxu0 %v1211_v17  ;;  %v1254_v17 = vld [vmem:[#allocation2 + $0x24] ss:$8 sps:$4 sm:$0xff]  }
  0x79   :  { %1157 = vmatprep.mubr.bf16.mxu0 %v1212_v18  ;;  %v1226_v18 = vld [vmem:[#allocation2 + $0x60] ss:$8 sps:$4 sm:$0xff]  }
  0x80   :  { %1158 = vmatmul.mubr.bf16.gmra.mrb[20].mxu0 %v1213_v19  ;;  %v1256_v19 = vld [vmem:[#allocation2 + $0x20] ss:$8 sps:$4 sm:$0xff]  }
  0x81   :  { %1161 = vmatprep.mubr.bf16.mxu0 %v1214_v20  ;;  %v1227_v20 = vld [vmem:[#allocation2 + $0x74] ss:$8 sps:$4 sm:$0xff]  }
  0x88   :  { %1162 = vmatmul.mubr.bf16.gmra.mrb[24].mxu0 %v1215_v21  ;;  %v1260_v21 = vld [vmem:[#allocation2 + $0x34] ss:$8 sps:$4 sm:$0xff]  }
  0x89   :  { %1165 = vmatprep.mubr.bf16.mxu0 %v1216_v22  ;;  %v1229_v22 = vld [vmem:[#allocation2 + $0x70] ss:$8 sps:$4 sm:$0xff]  }
  0x90   :  { %1166 = vmatmul.mubr.bf16.gmra.mrb[28].mxu0 %v1217_v23  ;;  %v1262_v23 = vld [vmem:[#allocation2 + $0x30] ss:$8 sps:$4 sm:$0xff]  }
  0x91   :  { %718 = vmatprep.mubr.bf16.mxu0 %v1244_v25  ;;  %v1232_v25 = vld [vmem:[#allocation2 + $0x80] ss:$8 sps:$4 sm:$0xff]  }
 0x12b   :  { %v1139_v26 = vpop.f32.mrb[0].mxu0 }
 0x12c   :  { %v319_v27 = vpop.f32.mrb[1].mxu0 }
 0x12d   :  { %v1140_v28 = vpop.f32.mrb[2].mxu0 }
 0x12e   :  { %v447_v29 = vpack.c.bf16 %v1140_v28, %v1139_v26  ;;  %v322_v30 = vpop.f32.mrb[3].mxu0  ;;  %v1233_v26 = vld [vmem:[#allocation2 + $0x94] ss:$8 sps:$4 sm:$0xff]   ;;  %v1236_v28 = vld [vmem:[#allocation2 + $0xa4] ss:$8 sps:$4 sm:$0xff]  }
 0x12f   :  { %v446_v31 = vpack.c.bf16 %v322_v30, %v319_v27  ;;  %v1235_v27 = vld [vmem:[#allocation2 + $0x90] ss:$8 sps:$4 sm:$0xff]   ;;  %v1239_v30 = vld [vmem:[#allocation2 + $0xb4] ss:$8 sps:$4 sm:$0xff]  }
 0x133   :  { %v1143_v32 = vpop.f32.mrb[4].mxu0 }
 0x134   :  { %v335_v33 = vpop.f32.mrb[5].mxu0 }
 0x135   :  { %v1144_v34 = vpop.f32.mrb[6].mxu0 }
 0x136   :  { %v449_v35 = vpack.c.bf16 %v1144_v34, %v1143_v32  ;;  %v338_v36 = vpop.f32.mrb[7].mxu0  ;;  %v1245_v32 = vld [vmem:[#allocation2 + $0xc4] ss:$8 sps:$4 sm:$0xff]   ;;  %v1251_v34 = vld [vmem:[#allocation2 + $0xd4] ss:$8 sps:$4 sm:$0xff]  }
 0x137   :  { %v448_v37 = vpack.c.bf16 %v338_v36, %v335_v33  ;;  %v1247_v33 = vld [vmem:[#allocation2 + $0xc0] ss:$8 sps:$4 sm:$0xff]   ;;  %v1257_v36 = vld [vmem:[#allocation2 + $0xe4] ss:$8 sps:$4 sm:$0xff]  }
 0x13b   :  { %v1147_v38 = vpop.f32.mrb[8].mxu0 }
 0x13c   :  { %v351_v39 = vpop.f32.mrb[9].mxu0 }
 0x13d   :  { %v1148_v40 = vpop.f32.mrb[10].mxu0 }
 0x13e   :  { %v451_v41 = vpack.c.bf16 %v1148_v40, %v1147_v38  ;;  %v354_v42 = vpop.f32.mrb[11].mxu0  ;;  %v1263_v38 = vld [vmem:[#allocation2 + $0xf4] ss:$8 sps:$4 sm:$0xff]  }
 0x13f   :  { %v450_v43 = vpack.c.bf16 %v354_v42, %v351_v39  ;;  %v1265_v39 = vld [vmem:[#allocation2 + $0xf0] ss:$8 sps:$4 sm:$0xff]  }
 0x143   :  { %v1151_v44 = vpop.f32.mrb[12].mxu0 }
 0x144   :  { %v367_v45 = vpop.f32.mrb[13].mxu0 }
 0x145   :  { %v1152_v46 = vpop.f32.mrb[14].mxu0 }
 0x146   :  { %v453_v47 = vpack.c.bf16 %v1152_v46, %v1151_v44  ;;  %v370_v48 = vpop.f32.mrb[15].mxu0 }
 0x147   :  { %v452_v49 = vpack.c.bf16 %v370_v48, %v367_v45 }
 0x14b   :  { %v1155_v50 = vpop.f32.mrb[16].mxu0 }
 0x14c   :  { %v383_v51 = vpop.f32.mrb[17].mxu0 }
 0x14d   :  { %v1156_v52 = vpop.f32.mrb[18].mxu0 }
 0x14e   :  { %v455_v53 = vpack.c.bf16 %v1156_v52, %v1155_v50  ;;  %v386_v54 = vpop.f32.mrb[19].mxu0 }
 0x14f   :  { %v454_v55 = vpack.c.bf16 %v386_v54, %v383_v51 }
 0x151   :  { %1009 = vmatprep.subr.bf16.mxu0 %v454_v55  ;;  %1169 = vmatprep.subr.bf16.mxu1 %v454_v55 }
 0x152   :  { %1010 = vmatpush3.bf16.msra.mxu0 %v446_v31  ;;  %1177 = vmatpush3.bf16.msra.mxu1 %v446_v31  ;;  %v1241_v31 = vld [vmem:[#allocation2 + $0xb0] ss:$8 sps:$4 sm:$0xff]  }
 0x153   :  { %v1159_v56 = vpop.f32.mrb[20].mxu0  ;;  %1011 = vmatprep.subr.bf16.mxu0 %v455_v53  ;;  %1170 = vmatprep.subr.bf16.mxu1 %v455_v53 }
 0x154   :  { %v399_v57 = vpop.f32.mrb[21].mxu0 }
 0x155   :  { %v1160_v58 = vpop.f32.mrb[22].mxu0 }
 0x156   :  { %v457_v59 = vpack.c.bf16 %v1160_v58, %v1159_v56  ;;  %v402_v60 = vpop.f32.mrb[23].mxu0  ;;  %1012 = vmatpush3.bf16.msra.mxu0 %v447_v29  ;;  %1178 = vmatpush3.bf16.msra.mxu1 %v447_v29  ;;  %v1238_v29 = vld [vmem:[#allocation2 + $0xa0] ss:$8 sps:$4 sm:$0xff]  }
 0x157   :  { %v456_v61 = vpack.c.bf16 %v402_v60, %v399_v57 }
 0x159   :  { %1013 = vmatprep.subr.bf16.mxu0 %v456_v61  ;;  %1171 = vmatprep.subr.bf16.mxu1 %v456_v61 }
 0x15a   :  { %1014 = vmatpush3.bf16.msra.mxu0 %v448_v37  ;;  %1179 = vmatpush3.bf16.msra.mxu1 %v448_v37  ;;  %v1259_v37 = vld [vmem:[#allocation2 + $0xe0] ss:$8 sps:$4 sm:$0xff]  }
 0x15b   :  { %v1163_v62 = vpop.f32.mrb[24].mxu0  ;;  %1015 = vmatprep.subr.bf16.mxu0 %v457_v59  ;;  %1172 = vmatprep.subr.bf16.mxu1 %v457_v59 }
 0x15c   :  { %v415_v63 = vpop.f32.mrb[25].mxu0 }
 0x15d   :  { %v1164_v0 = vpop.f32.mrb[26].mxu0 }
 0x15e   :  { %v459_v1 = vpack.c.bf16 %v1164_v0, %v1163_v62  ;;  %v418_v2 = vpop.f32.mrb[27].mxu0  ;;  %1016 = vmatpush3.bf16.msra.mxu0 %v449_v35  ;;  %1180 = vmatpush3.bf16.msra.mxu1 %v449_v35  ;;  %v1253_v35 = vld [vmem:[#allocation2 + $0xd0] ss:$8 sps:$4 sm:$0xff]  }
 0x15f   :  { %v458_v3 = vpack.c.bf16 %v418_v2, %v415_v63 }
 0x161   :  { %1017 = vmatprep.subr.bf16.mxu0 %v458_v3  ;;  %1173 = vmatprep.subr.bf16.mxu1 %v458_v3 }
 0x162   :  { %1018 = vmatpush3.bf16.msra.mxu0 %v450_v43  ;;  %1181 = vmatpush3.bf16.msra.mxu1 %v450_v43 }
 0x163   :  { %v1167_v4 = vpop.f32.mrb[28].mxu0  ;;  %1019 = vmatprep.subr.bf16.mxu0 %v459_v1  ;;  %1174 = vmatprep.subr.bf16.mxu1 %v459_v1 }
 0x164   :  { %v431_v5 = vpop.f32.mrb[29].mxu0 }
 0x165   :  { %v1168_v6 = vpop.f32.mrb[30].mxu0 }
 0x166   :  { %v461_v7 = vpack.c.bf16 %v1168_v6, %v1167_v4  ;;  %v434_v8 = vpop.f32.mrb[31].mxu0  ;;  %1020 = vmatpush3.bf16.msra.mxu0 %v451_v41  ;;  %1182 = vmatpush3.bf16.msra.mxu1 %v451_v41 }
 0x167   :  { %v460_v9 = vpack.c.bf16 %v434_v8, %v431_v5 }
 0x169   :  { %1021 = vmatprep.subr.bf16.mxu0 %v460_v9  ;;  %1175 = vmatprep.subr.bf16.mxu1 %v460_v9 }
 0x16a   :  { %1022 = vmatpush3.bf16.msra.mxu0 %v452_v49  ;;  %1183 = vmatpush3.bf16.msra.mxu1 %v452_v49 }
 0x16b   :  { %1023 = vmatprep.subr.bf16.mxu0 %v461_v7  ;;  %1176 = vmatprep.subr.bf16.mxu1 %v461_v7 }
 0x16e   :  { %1024 = vmatpush3.bf16.msra.mxu0 %v453_v47  ;;  %1184 = vmatpush3.bf16.msra.mxu1 %v453_v47 }
 0x171   :  { %751 = vmatmul.mubr.bf16.vlgmr.msra.gmra.mrb[0].mxu1 %v1218_v10  ;;  %719 = vmatmul.mubr.bf16.vlgmr.msra.gmra.mrb[32].mxu0 %v1242_v11 }
 0x172   :  { %758 = vmatprep.mubr.bf16.mxu1 %v1221_v12  ;;  %726 = vmatprep.mubr.bf16.mxu0 %v1248_v13 }
 0x179   :  { %759 = vmatmul.mubr.bf16.gmra.mrb[4].mxu1 %v1223_v14  ;;  %727 = vmatmul.mubr.bf16.gmra.mrb[36].mxu0 %v1250_v15 }
 0x17a   :  { %766 = vmatprep.mubr.bf16.mxu1 %v1224_v16  ;;  %734 = vmatprep.mubr.bf16.mxu0 %v1254_v17 }
 0x181   :  { %767 = vmatmul.mubr.bf16.gmra.mrb[8].mxu1 %v1226_v18  ;;  %735 = vmatmul.mubr.bf16.gmra.mrb[40].mxu0 %v1256_v19 }
 0x182   :  { %774 = vmatprep.mubr.bf16.mxu1 %v1227_v20  ;;  %742 = vmatprep.mubr.bf16.mxu0 %v1260_v21 }
 0x189   :  { %775 = vmatmul.mubr.bf16.gmra.mrb[12].mxu1 %v1229_v22  ;;  %743 = vmatmul.mubr.bf16.gmra.mrb[44].mxu0 %v1262_v23 }
 0x18a   :  { %782 = vmatprep.mubr.bf16.mxu1 %v1230_v24 }
 0x191   :  { %783 = vmatmul.mubr.bf16.gmra.mrb[16].mxu1 %v1232_v25 }
 0x192   :  { %790 = vmatprep.mubr.bf16.mxu1 %v1233_v26 }
 0x199   :  { %791 = vmatmul.mubr.bf16.gmra.mrb[20].mxu1 %v1235_v27 }
 0x19a   :  { %798 = vmatprep.mubr.bf16.mxu1 %v1236_v28 }
 0x1a1   :  { %799 = vmatmul.mubr.bf16.gmra.mrb[24].mxu1 %v1238_v29 }
 0x1a2   :  { %806 = vmatprep.mubr.bf16.mxu1 %v1239_v30 }
 0x1a9   :  { %807 = vmatmul.mubr.bf16.gmra.mrb[28].mxu1 %v1241_v31 }
 0x1aa   :  { %814 = vmatprep.mubr.bf16.mxu1 %v1245_v32 }
 0x1b1   :  { %815 = vmatmul.mubr.bf16.gmra.mrb[32].mxu1 %v1247_v33 }
 0x1b2   :  { %822 = vmatprep.mubr.bf16.mxu1 %v1251_v34 }
 0x1b9   :  { %823 = vmatmul.mubr.bf16.gmra.mrb[36].mxu1 %v1253_v35 }
 0x1ba   :  { %830 = vmatprep.mubr.bf16.mxu1 %v1257_v36 }
 0x1c1   :  { %831 = vmatmul.mubr.bf16.gmra.mrb[40].mxu1 %v1259_v37 }
 0x1c2   :  { %838 = vmatprep.mubr.bf16.mxu1 %v1263_v38 }
 0x1c9   :  { %839 = vmatmul.mubr.bf16.gmra.mrb[44].mxu1 %v1265_v39 }
 0x244   :  { %v1049_v40 = vpop.f32.mrb[0].mxu1  ;;  %v1025_v41 = vpop.f32.mrb[32].mxu0 }
 0x245   :  { %v1050_v42 = vpop.f32.mrb[1].mxu1  ;;  %v1026_v43 = vpop.f32.mrb[33].mxu0 }
 0x246   :  { %v1051_v44 = vadd.f32 %v1050_v42, %v1049_v40  ;;  %v1052_v45 = vpop.f32.mrb[2].mxu1  ;;  %v1027_v46 = vadd.f32 %v1026_v43, %v1025_v41  ;;  %v1028_v47 = vpop.f32.mrb[34].mxu0 }
 0x247   :  { %v1053_v48 = vpop.f32.mrb[3].mxu1  ;;  %v1029_v49 = vpop.f32.mrb[35].mxu0 }
 0x248   :  { %v1054_v50 = vadd.f32 %v1053_v48, %v1052_v45  ;;  %v1030_v51 = vadd.f32 %v1029_v49, %v1028_v47  ;;  %887 = vst [vmem:[#allocation8 + $0x40] sm:$0xff] %v1051_v44  ;;  %879 = vst [vmem:[#allocation8] sm:$0xff] %v1027_v46 }
 0x24a   :  { %888 = vst [vmem:[#allocation8 + $0x48] sm:$0xff] %v1054_v50  ;;  %880 = vst [vmem:[#allocation8 + $0x8] sm:$0xff] %v1030_v51 }
 0x24c   :  { %v1055_v52 = vpop.f32.mrb[4].mxu1  ;;  %v1031_v53 = vpop.f32.mrb[36].mxu0 }
 0x24d   :  { %v1056_v54 = vpop.f32.mrb[5].mxu1  ;;  %v1032_v55 = vpop.f32.mrb[37].mxu0 }
 0x24e   :  { %v1057_v56 = vadd.f32 %v1056_v54, %v1055_v52  ;;  %v1058_v57 = vpop.f32.mrb[6].mxu1  ;;  %v1033_v58 = vadd.f32 %v1032_v55, %v1031_v53  ;;  %v1034_v59 = vpop.f32.mrb[38].mxu0 }
 0x24f   :  { %v1059_v60 = vpop.f32.mrb[7].mxu1  ;;  %v1035_v61 = vpop.f32.mrb[39].mxu0 }
 0x250   :  { %v1060_v62 = vadd.f32 %v1059_v60, %v1058_v57  ;;  %v1036_v63 = vadd.f32 %v1035_v61, %v1034_v59  ;;  %889 = vst [vmem:[#allocation8 + $0x50] sm:$0xff] %v1057_v56  ;;  %881 = vst [vmem:[#allocation8 + $0x10] sm:$0xff] %v1033_v58 }
 0x252   :  { %890 = vst [vmem:[#allocation8 + $0x58] sm:$0xff] %v1060_v62  ;;  %882 = vst [vmem:[#allocation8 + $0x18] sm:$0xff] %v1036_v63 }
 0x254   :  { %v1061_v0 = vpop.f32.mrb[8].mxu1  ;;  %v1037_v1 = vpop.f32.mrb[40].mxu0 }
 0x255   :  { %v1062_v2 = vpop.f32.mrb[9].mxu1  ;;  %v1038_v3 = vpop.f32.mrb[41].mxu0 }
 0x256   :  { %v1063_v4 = vadd.f32 %v1062_v2, %v1061_v0  ;;  %v1064_v5 = vpop.f32.mrb[10].mxu1  ;;  %v1039_v6 = vadd.f32 %v1038_v3, %v1037_v1  ;;  %v1040_v7 = vpop.f32.mrb[42].mxu0 }
 0x257   :  { %v1065_v8 = vpop.f32.mrb[11].mxu1  ;;  %v1041_v9 = vpop.f32.mrb[43].mxu0 }
 0x258   :  { %v1066_v10 = vadd.f32 %v1065_v8, %v1064_v5  ;;  %v1042_v11 = vadd.f32 %v1041_v9, %v1040_v7  ;;  %891 = vst [vmem:[#allocation8 + $0x60] sm:$0xff] %v1063_v4  ;;  %883 = vst [vmem:[#allocation8 + $0x20] sm:$0xff] %v1039_v6 }
 0x25a   :  { %892 = vst [vmem:[#allocation8 + $0x68] sm:$0xff] %v1066_v10  ;;  %884 = vst [vmem:[#allocation8 + $0x28] sm:$0xff] %v1042_v11 }
 0x25c   :  { %v1067_v12 = vpop.f32.mrb[12].mxu1  ;;  %v1043_v13 = vpop.f32.mrb[44].mxu0 }
 0x25d   :  { %v1068_v14 = vpop.f32.mrb[13].mxu1  ;;  %v1044_v15 = vpop.f32.mrb[45].mxu0 }
 0x25e   :  { %v1069_v16 = vadd.f32 %v1068_v14, %v1067_v12  ;;  %v1070_v17 = vpop.f32.mrb[14].mxu1  ;;  %v1045_v18 = vadd.f32 %v1044_v15, %v1043_v13  ;;  %v1046_v19 = vpop.f32.mrb[46].mxu0 }
 0x25f   :  { %v1071_v20 = vpop.f32.mrb[15].mxu1  ;;  %v1047_v21 = vpop.f32.mrb[47].mxu0 }
 0x260   :  { %v1072_v22 = vadd.f32 %v1071_v20, %v1070_v17  ;;  %v1048_v23 = vadd.f32 %v1047_v21, %v1046_v19  ;;  %893 = vst [vmem:[#allocation8 + $0x70] sm:$0xff] %v1069_v16  ;;  %885 = vst [vmem:[#allocation8 + $0x30] sm:$0xff] %v1045_v18 }
 0x262   :  { %894 = vst [vmem:[#allocation8 + $0x78] sm:$0xff] %v1072_v22  ;;  %886 = vst [vmem:[#allocation8 + $0x38] sm:$0xff] %v1048_v23 }
 0x264   :  { %v1073_v24 = vpop.f32.mrb[16].mxu1 }
 0x265   :  { %v1074_v25 = vpop.f32.mrb[17].mxu1 }
 0x266   :  { %v1075_v26 = vadd.f32 %v1074_v25, %v1073_v24  ;;  %v1076_v27 = vpop.f32.mrb[18].mxu1 }
 0x267   :  { %v1077_v28 = vpop.f32.mrb[19].mxu1 }
 0x268   :  { %v1078_v29 = vadd.f32 %v1077_v28, %v1076_v27  ;;  %895 = vst [vmem:[#allocation8 + $0x80] sm:$0xff] %v1075_v26 }
 0x26a   :  { %896 = vst [vmem:[#allocation8 + $0x88] sm:$0xff] %v1078_v29 }
 0x26c   :  { %v1079_v30 = vpop.f32.mrb[20].mxu1 }
 0x26d   :  { %v1080_v31 = vpop.f32.mrb[21].mxu1 }
 0x26e   :  { %v1081_v32 = vadd.f32 %v1080_v31, %v1079_v30  ;;  %v1082_v33 = vpop.f32.mrb[22].mxu1 }
 0x26f   :  { %v1083_v34 = vpop.f32.mrb[23].mxu1 }
 0x270   :  { %v1084_v35 = vadd.f32 %v1083_v34, %v1082_v33  ;;  %897 = vst [vmem:[#allocation8 + $0x90] sm:$0xff] %v1081_v32 }
 0x272   :  { %898 = vst [vmem:[#allocation8 + $0x98] sm:$0xff] %v1084_v35 }
 0x274   :  { %v1085_v36 = vpop.f32.mrb[24].mxu1 }
 0x275   :  { %v1086_v37 = vpop.f32.mrb[25].mxu1 }
 0x276   :  { %v1087_v38 = vadd.f32 %v1086_v37, %v1085_v36  ;;  %v1088_v39 = vpop.f32.mrb[26].mxu1 }
 0x277   :  { %v1089_v40 = vpop.f32.mrb[27].mxu1 }
 0x278   :  { %v1090_v41 = vadd.f32 %v1089_v40, %v1088_v39  ;;  %899 = vst [vmem:[#allocation8 + $0xa0] sm:$0xff] %v1087_v38 }
 0x27a   :  { %900 = vst [vmem:[#allocation8 + $0xa8] sm:$0xff] %v1090_v41 }
 0x27c   :  { %v1091_v42 = vpop.f32.mrb[28].mxu1 }
 0x27d   :  { %v1092_v43 = vpop.f32.mrb[29].mxu1 }
 0x27e   :  { %v1093_v44 = vadd.f32 %v1092_v43, %v1091_v42  ;;  %v1094_v45 = vpop.f32.mrb[30].mxu1 }
 0x27f   :  { %v1095_v46 = vpop.f32.mrb[31].mxu1 }
 0x280   :  { %v1096_v47 = vadd.f32 %v1095_v46, %v1094_v45  ;;  %901 = vst [vmem:[#allocation8 + $0xb0] sm:$0xff] %v1093_v44 }
 0x282   :  { %902 = vst [vmem:[#allocation8 + $0xb8] sm:$0xff] %v1096_v47 }
 0x284   :  { %v1097_v48 = vpop.f32.mrb[32].mxu1 }
 0x285   :  { %v1098_v49 = vpop.f32.mrb[33].mxu1 }
 0x286   :  { %v1099_v50 = vadd.f32 %v1098_v49, %v1097_v48  ;;  %v1100_v51 = vpop.f32.mrb[34].mxu1 }
 0x287   :  { %v1101_v52 = vpop.f32.mrb[35].mxu1 }
 0x288   :  { %v1102_v53 = vadd.f32 %v1101_v52, %v1100_v51  ;;  %903 = vst [vmem:[#allocation8 + $0xc0] sm:$0xff] %v1099_v50 }
 0x28a   :  { %904 = vst [vmem:[#allocation8 + $0xc8] sm:$0xff] %v1102_v53 }
 0x28c   :  { %v1103_v54 = vpop.f32.mrb[36].mxu1 }
 0x28d   :  { %v1104_v55 = vpop.f32.mrb[37].mxu1 }
 0x28e   :  { %v1105_v56 = vadd.f32 %v1104_v55, %v1103_v54  ;;  %v1106_v57 = vpop.f32.mrb[38].mxu1 }
 0x28f   :  { %v1107_v58 = vpop.f32.mrb[39].mxu1 }
 0x290   :  { %v1108_v59 = vadd.f32 %v1107_v58, %v1106_v57  ;;  %905 = vst [vmem:[#allocation8 + $0xd0] sm:$0xff] %v1105_v56 }
 0x292   :  { %906 = vst [vmem:[#allocation8 + $0xd8] sm:$0xff] %v1108_v59 }
 0x294   :  { %v1109_v60 = vpop.f32.mrb[40].mxu1 }
 0x295   :  { %v1110_v61 = vpop.f32.mrb[41].mxu1 }
 0x296   :  { %v1111_v62 = vadd.f32 %v1110_v61, %v1109_v60  ;;  %v1112_v63 = vpop.f32.mrb[42].mxu1 }
 0x297   :  { %v1113_v0 = vpop.f32.mrb[43].mxu1 }
 0x298   :  { %v1114_v1 = vadd.f32 %v1113_v0, %v1112_v63  ;;  %907 = vst [vmem:[#allocation8 + $0xe0] sm:$0xff] %v1111_v62 }
 0x29a   :  { %908 = vst [vmem:[#allocation8 + $0xe8] sm:$0xff] %v1114_v1 }
 0x29c   :  { %v1115_v2 = vpop.f32.mrb[44].mxu1 }
 0x29d   :  { %v1116_v3 = vpop.f32.mrb[45].mxu1 }
 0x29e   :  { %v1117_v4 = vadd.f32 %v1116_v3, %v1115_v2  ;;  %v1118_v5 = vpop.f32.mrb[46].mxu1 }
 0x29f   :  { %v1119_v6 = vpop.f32.mrb[47].mxu1 }
 0x2a0   :  { %v1120_v7 = vadd.f32 %v1119_v6, %v1118_v5  ;;  %909 = vst [vmem:[#allocation8 + $0xf0] sm:$0xff] %v1117_v4 }
 0x2a2   :  { %910 = vst [vmem:[#allocation8 + $0xf8] sm:$0xff] %v1120_v7 }
 0x2a3   :  { %1343 = shalt.err (!%p1340_p0)
}
 0x2a4   :  { %s1344_s27 = scalar_lea.hbm %s1451_s3, 4096 }
 0x2a5   :  { %p1345_p1 = scmp.ne.s32.totalorder %s1451_s3, %s1344_s27  ;;  %p1348_p2 = scmp.lt.u32.totalorder %s1344_s27, %s1451_s3 }
 0x2a7   :  { %p1350_p3 = pnand %p1348_p2, %p1345_p1 }
 0x2a9   :  { %1353 = shalt.err (!%p1350_p3)
}
 0x2aa   :  { %922 = dma.vmem_to_hbm [thread:$0]  %s917_s22, 4096, %s1451_s3, [#allocation4], %s1364_s1, %s1364_s1, %s1365_s9  }
 0x2ab   :  { %1358 = dma.done.wait [#allocation4], 4096  }
 0x2ac   :  { %1359 = vsyncadd [#allocation4], 4294963200 }
 0x2ad   :  { %926 = vsyncpa [#allocation3], 1 }
 0x2ae   :  { %927 = vsyncpa [#allocation6], 1 }
 0x2af   :  { %928 = vsyncpa [#allocation4], 1 }

</bundles_post_ra>
